<compile_context>
chip_gen: v7x
topology: tpu7x:2x2x1
jax: 0.10.0
libtpu: 0.0.40
codegen_flags: <defaults>
</compile_context>

<pallas_src>
import functools

import jax
import jax.numpy as jnp
from jax.experimental import pallas as pl
from jax.experimental.pallas import tpu as pltpu


# --------------------------------------------------------------------------- #
# Kernels (pure data movement -> HBM-bandwidth bound)
# --------------------------------------------------------------------------- #
def _copy_block_kernel(x_ref, o_ref):
    # Straight block copy.  Used for the truncation tiles and for the aligned
    # tiling fast path; BlockSpecs do all the placement / clipping.
    o_ref[...] = x_ref[...]


def _tile_concat_kernel(x_ref, o_ref, *, max_len):
    # General (lane-unaligned L) padding: build the periodic extension as a
    # value with log-depth lane-dim concatenates (compile-friendly even for
    # very short clips), then store the full lane-dense (bB, max_len) block.
    tiled = x_ref[...]
    while tiled.shape[1] < max_len:          # static shapes -> unrolled at trace
        tiled = jnp.concatenate([tiled, tiled], axis=-1)
    o_ref[...] = tiled[:, :max_len]


def _slab_copy_kernel(x_ref, o_ref):
    # Fallback path: one full (bB, L) slab per grid step (no sublane scatter).
    o_ref[...] = x_ref[...]


# --------------------------------------------------------------------------- #
# Small helpers
# --------------------------------------------------------------------------- #
def _batch_tile(B, itemsize):
    # Fill whole sublane tiles: (8,128) f32, (16,128) bf16/int16, (32,128) int8.
    pack = max(1, 4 // max(1, itemsize))
    base = 8 * pack
    return B if B <= base else base


def _params(sem, vmem_need_bytes):
    # Explicit scoped-VMEM limit: v5e defaults to 16 MiB, and we want headroom
    # but never silently rely on the 32 MiB default.  Cap well below anything
    # pathological; at the module default (max_len=96000, f32) the need is
    # ~20-30 MiB, comfortably inside v7x's 64 MiB physical VMEM.
    vmem = int(min(128 * 2**20, max(vmem_need_bytes + (8 << 20), 16 << 20)))
    return pltpu.CompilerParams(dimension_semantics=sem, vmem_limit_bytes=vmem)


# --------------------------------------------------------------------------- #
# General-L (lane-unaligned) padding paths
# --------------------------------------------------------------------------- #
def _pad_unaligned_direct(x, max_len, bB, nb, itemsize):
    B, L = x.shape
    # in (bB,L)x2 + out (bB,max_len)x2 + doubled concat temp (< 2*max_len cols).
    vmem_need = bB * itemsize * (2 * L + 4 * max_len)
    return pl.pallas_call(
        functools.partial(_tile_concat_kernel, max_len=max_len),
        out_shape=jax.ShapeDtypeStruct((B, max_len), x.dtype),
        grid_spec=pltpu.PrefetchScalarGridSpec(
            num_scalar_prefetch=0,
            grid=(nb,),
            in_specs=[pl.BlockSpec((bB, L), lambda i: (i, 0))],
            out_specs=pl.BlockSpec((bB, max_len), lambda i: (i, 0)),
        ),
        compiler_params=_params(("parallel",), vmem_need),
        cost_estimate=pl.CostEstimate(
            flops=0, transcendentals=0,
            bytes_accessed=B * (L + max_len) * itemsize),
    )(x)


def _pad_unaligned_two_pass(x, max_len, multiple, bB, nb, itemsize):
    B, L = x.shape
    vmem_need = 4 * bB * L * itemsize
    out3 = pl.pallas_call(
        _slab_copy_kernel,
        out_shape=jax.ShapeDtypeStruct((multiple, B, L), x.dtype),
        grid_spec=pltpu.PrefetchScalarGridSpec(
            num_scalar_prefetch=0,
            grid=(nb, multiple),
            in_specs=[pl.BlockSpec((bB, L), lambda i, r: (i, 0))],
            # (None, bB, L): every store is a full (bB, L) slab, never a single
            # sublane row.
            out_specs=pl.BlockSpec((None, bB, L), lambda i, r: (r, i, 0)),
        ),
        compiler_params=_params(("parallel", "parallel"), vmem_need),
        cost_estimate=pl.CostEstimate(
            flops=0, transcendentals=0,
            bytes_accessed=B * (L + multiple * L) * itemsize),
    )(x)
    # TODO(synk): this fallback pays one extra HBM pass for the relayout+slice;
    # it is only reachable if the direct single-pass kernel fails to lower.
    return jnp.moveaxis(out3, 0, 1).reshape(B, multiple * L)[:, :max_len]


# --------------------------------------------------------------------------- #
# Wrapper (forward pass of Pad_trunc_wav)
# --------------------------------------------------------------------------- #
def pad_trunc_wav(x, max_len: int = 6 * 16000):
    """Pallas equivalent of Pad_trunc_wav.forward.  x: (B, L) -> (B, max_len)."""
    B, L = x.shape
    itemsize = jnp.dtype(x.dtype).itemsize
    bB = _batch_tile(B, itemsize)
    nb = pl.cdiv(B, bB)

    # ----------------------- truncation branch (L >= max_len) ---------------- #
    if L >= max_len:
        # Column-tiled copy: reads only ~max_len columns per row (cropped,
        # 128-aligned input blocks even when max_len % 128 != 0), and the 2-D
        # parallel grid keeps both v7x TensorCores fed at small B.
        aligned_ml = pl.cdiv(max_len, 128) * 128
        tc = min(aligned_ml, 16 * 1024)          # multiple of 128 by construction
        ncol = pl.cdiv(max_len, tc)
        vmem_need = 4 * bB * tc * itemsize       # in+out, double buffered
        return pl.pallas_call(
            _copy_block_kernel,
            out_shape=jax.ShapeDtypeStruct((B, max_len), x.dtype),
            grid_spec=pltpu.PrefetchScalarGridSpec(
                num_scalar_prefetch=0,
                grid=(nb, ncol),
                in_specs=[pl.BlockSpec((bB, tc), lambda i, j: (i, j))],
                out_specs=pl.BlockSpec((bB, tc), lambda i, j: (i, j)),
            ),
            compiler_params=_params(("parallel", "parallel"), vmem_need),
            cost_estimate=pl.CostEstimate(
                flops=0, transcendentals=0,
                bytes_accessed=2 * B * max_len * itemsize),
        )(x)

    # ----------------------- padding branch (L < max_len) -------------------- #
    multiple = pl.cdiv(max_len, L)               # >= 2 here; no redundant copy

    if L % 128 == 0:
        # Lane-aligned fast path: grid over (batch tile, copy index); each step
        # is a plain (bB, L) block copy, Pallas clips the final partial column
        # block and skips re-fetching the unchanged input block.  Both axes are
        # "parallel" so the copies shard across v7x's two TensorCores.
        vmem_need = 4 * bB * L * itemsize
        return pl.pallas_call(
            _copy_block_kernel,
            out_shape=jax.ShapeDtypeStruct((B, max_len), x.dtype),
            grid_spec=pltpu.PrefetchScalarGridSpec(
                num_scalar_prefetch=0,
                grid=(nb, multiple),
                in_specs=[pl.BlockSpec((bB, L), lambda i, r: (i, 0))],
                out_specs=pl.BlockSpec((bB, L), lambda i, r: (i, r)),
            ),
            compiler_params=_params(("parallel", "parallel"), vmem_need),
            cost_estimate=pl.CostEstimate(
                flops=0, transcendentals=0,
                bytes_accessed=B * (L + max_len) * itemsize),
        )(x)

    # General path (arbitrary, non-128-multiple L): single HBM pass, lane-dense
    # full-block stores.  If the running Mosaic build rejects the unaligned
    # lane-dim concatenate, fall back to the always-lowerable two-pass variant.
    # (The except only triggers when called eagerly; under an outer jit the
    # direct path is simply staged out.)
    try:
        return _pad_unaligned_direct(x, max_len, bB, nb, itemsize)
    except Exception:
        return _pad_unaligned_two_pass(x, max_len, multiple, bB, nb, itemsize)


# --------------------------------------------------------------------------- #
# Self-test
# --------------------------------------------------------------------------- #
if __name__ == "__main__":
    key = jax.random.PRNGKey(0)
    ks = jax.random.split(key, 6)

    def ref_impl(x, max_len):
        B, L = x.shape
        if L < max_len:
            multiple = max_len // L + 1
            return jnp.tile(x, (1, multiple))[:, :max_len]
        return x[:, :max_len]

    def check(x, max_len):
        out = jax.block_until_ready(pad_trunc_wav(x, max_len))
        ref = ref_impl(x, max_len)
        assert out.shape == ref.shape and out.dtype == x.dtype, (out.shape, out.dtype)
        assert jnp.array_equal(out, ref), (x.shape, max_len)

    MAX_LEN = 2048  # scaled-down stand-in for the default 6 * 16000

    # 1) padding, lane-aligned L  -> fast 2-D copy grid
    check(jax.random.normal(ks[0], (2, 640), dtype=jnp.float32), MAX_LEN)
    # 2) truncation (L > max_len), aligned max_len
    check(jax.random.normal(ks[1], (2, MAX_LEN + 384), dtype=jnp.float32), MAX_LEN)
    # 3) padding, arbitrary unaligned L  -> single-pass concatenate path
    check(jax.random.normal(ks[2], (2, 600), dtype=jnp.float32), MAX_LEN)
    # 4) truncation with unaligned max_len (cropped 128-aligned input blocks)
    check(jax.random.normal(ks[3], (2, 3000), dtype=jnp.float32), 1000)
    # 5) padding with unaligned L and unaligned max_len
    check(jax.random.normal(ks[4], (2, 300), dtype=jnp.float32), 1000)
    # 6) bf16, batch > sublane tile (bB=16, partial last batch block)
    check(jax.random.normal(ks[5], (20, 256), dtype=jnp.bfloat16), 1024)

    print("KERNEL_OK")
</pallas_src>

<mosaic_0001>
module attributes {stable_mosaic.version = 11 : i64} {
  func.func @_copy_block_kernel(%arg0: i32, %arg1: i32, %arg2: memref<2x640xf32, #tpu.memory_space<vmem>>, %arg3: memref<2x640xf32, #tpu.memory_space<vmem>>) attributes {dimension_semantics = [#tpu.dimension_semantics<parallel>, #tpu.dimension_semantics<parallel>], iteration_bounds = array<i64: 1, 4>, scalar_prefetch = 0 : i64, scratch_operands = 0 : i64, tpu.core_type = #tpu.core_type<tc>, window_params = [{transform_indices = @transform_0, window_bounds = array<i64: 2, 640>}, {transform_indices = @transform_1, window_bounds = array<i64: 2, 640>}]} {
    %c0 = arith.constant 0 : index
    %c0_0 = arith.constant 0 : index
    %0 = vector.load %arg2[%c0, %c0_0] : memref<2x640xf32, #tpu.memory_space<vmem>>, vector<2x640xf32>
    %c0_1 = arith.constant 0 : index
    %c0_2 = arith.constant 0 : index
    %1 = vector.load %arg3[%c0_1, %c0_2] : memref<2x640xf32, #tpu.memory_space<vmem>>, vector<2x640xf32>
    tpu.vector_store %arg3[%c0_1, %c0_2], %0 {strides = array<i32>} : memref<2x640xf32, #tpu.memory_space<vmem>>, vector<2x640xf32>,
    return
  }
  func.func @transform_0(%arg0: i32, %arg1: i32) -> (i32, i32) {
    %c0_i32 = arith.constant 0 : i32
    %c0_i32_0 = arith.constant 0 : i32
    return %arg0, %c0_i32 : i32, i32
  }
  func.func @transform_1(%arg0: i32, %arg1: i32) -> (i32, i32) {
    %c0_i32 = arith.constant 0 : i32
    return %arg0, %arg1 : i32, i32
  }
}

</mosaic_0001>

<bundles_post_ra>
// kernel: tpu_custom_call.1
= control target key start
LH: loop header
LB: loop body
LE: loop exit
PB: predicated region body
PF: predicated region fallthrough
CT: control target
= control target key end

     0   :  { %6 = vsyncpa [#allocation3], 0  ;;  %s591_s0 = inlined_call_operand.hbm [shape: f32[2,640], index: 0, kind: input, shape index: {}]   ;;  %s592_s1 = inlined_call_operand.hbm [shape: f32[2,2048], index: 1, kind: output, shape index: {}]  }
   0x1   :  { %7 = vsyncpa [#allocation4], 0 }
   0x2   :  { %9 = vsyncpa [#allocation4 + $0x1], 0  ;;  %s438_s6 = smov 0   ;;  %s440_s7 = smov 0  }
   0x3   :  { %s442_s8 = smov 0   ;;  %s444_s9 = smov 0  }
   0x4   :  { %s446_s10 = smov 0   ;;  %s448_s11 = smov 0  }
   0x5 LB: > { %s234_s12 = sadd.s32 4294967295, %s424_s11   ;;  %s235_s13 = sadd.s32 4294967294, %s424_s11   ;;  %s424_s11 = sphi %s448_s11, %s15_s11   ;;  %s420_s10 = sphi %s446_s10, %s609_s10   ;;  %s416_s9 = sphi %s444_s9, %s608_s9   ;;  %s412_s8 = sphi %s442_s8, %s607_s8   ;;  %s408_s7 = sphi %s440_s7, %s606_s7   ;;  %s404_s6 = sphi %s438_s6, %s605_s6  }
   0x6   : > { %s24_s14 = sadd.s32 1, %s420_s10  ;;  %s62_s15 = sadd.s32 1, %s412_s8 }
   0x7   : > { %p25_p0 = scmp.ge.s32.totalorder %s24_s14, 4  ;;  %p72_p1 = scmp.ne.s32.totalorder %s412_s8, %s408_s7 }
   0x8   : > { %p73_p2 = scmp.eq.s32.totalorder %s234_s12, 3  ;;  %p78_p3 = scmp.ne.s32.totalorder %s408_s7, %s404_s6 }
   0x9   : > { %s611_s14 = smov (%p25_p0, %s24_s14), 0  ;;  %p79_p5 = scmp.eq.s32.totalorder %s235_s13, 3 }
   0xa   : > { %p478_p4 = por %p73_p2, %p72_p1  ;;  %s58_s17 = ssub.s32 %s420_s10, %s611_s14 }
   0xb   : > { %p236_p6 = scmp.ge.s32.totalorder %s424_s11, 1  ;;  %p60_p7 = scmp.eq.s32.totalorder %s58_s17, 0 }
   0xc   : > { %s596_s16 = scalar_select %p478_p4, 1, 0 }
   0xd   : > { %p485_p8 = por %p79_p5, %p78_p3  ;;  %p86_p9 = scmp.lt.s32.totalorder %s424_s11, 5 }
   0xe   : > { %s491_s19 = scalar_select %p60_p7, %s412_s8, %s62_s15  }
   0xf   : > { %s597_s18 = scalar_select %p485_p8, 1, 0 }
  0x10   : > { %p493_p10 = pnand %p236_p6, %p86_p9  ;;  %p497_p11 = scmp.eq.s32.totalorder %s234_s12, 0 }
  0x11   : > { %s426_s22 = smov [#allocation2]   ;;  %s314_s27 = scalar_lea.hbm %s591_s0, 160 }
  0x12   : > { %s598_s20 = scalar_select %p493_p10, 1, 0 }
  0x13   : > { %s599_s21 = scalar_select %p497_p11, 1, 0 }
  0x14   : > { %p254_p12 = pneg %p493_p10  ;;  %s102_s23 = sshll.u32 %s426_s22, 4  ;;  %s103_s23 = int_to_ptr.vmem [resolvable:$true] %s102_s23 }
  0x15   : > { %p315_p0 = scmp.ne.s32.totalorder %s591_s0, %s314_s27  ;;  %p321_p5 = scmp.lt.u32.totalorder %s314_s27, %s591_s0 }
  0x16   : > { %p505_p13 = pnand %p497_p11, %p254_p12 }
  0x18   : > { %p316_p1 = pneg %p505_p13 }
  0x1a   : > { %p317_p2 = pnand %p316_p1, %p315_p0 }
  0x1c   : > { %p318_p3 = pneg %p317_p2 }
  0x1e   : > { %p323_p6 = pnand %p321_p5, %p318_p3 }
  0x20   : > { %326 = shalt.err (!%p323_p6)
}
  0x21   : > { %s327_s3 = scalar_lea.vmem %s103_s23, 160  ;;  %p335_p8 = scmp.lt.s32.totalorder %s103_s23, %s103_s23 }
  0x22   : > { %p328_p7 = scmp.ne.s32.totalorder %s103_s23, %s327_s3  ;;  %p336_p4 = scmp.lt.s32.totalorder %s327_s3, %s327_s3 }
  0x24   : > { %p330_p9 = pnand %p328_p7, %p316_p1  ;;  %p337_p11 = por %p336_p4, %p335_p8 }
  0x26   : > { %p331_p12 = pneg %p330_p9 }
  0x28   : > { %p338_p10 = pnand %p337_p11, %p331_p12 }
  0x2a   : > { %341 = shalt.err (!%p338_p10)
}
  0x2b   : > { %257 = dma.hbm_to_vmem [thread:$0]  (!%p505_p13), %s591_s0, 160, %s103_s23, [#allocation3]  }
  0x2c   : > { %p601_p0 = scmp.ne.s32.totalorder %s598_s20, 0 }
  0x2d   : > { %p602_p2 = scmp.ne.s32.totalorder (!%p601_p0), %s599_s21, 0 }
  0x2e   : > { %115 = sbr.rel (%p601_p0) target bundleno = 92 (0x5c), region = 24 }
  0x35   : > { %395 = dma.done.wait (%p602_p2), [#allocation3], 160  }
  0x36   : > { %397 = vsyncadd (%p602_p2), [#allocation3], 4294967136  ;;  %s127_s12 = sand.u32 1, %s408_s7   ;;  %v135_v0 = vld [vmem:[#allocation2] sm:$0xff]  ;;  %v136_v1 = vld [vmem:[#allocation2 + $0x8] sm:$0x3] }
  0x37   : > { %s248_s13 = smul.u32 10, %s127_s12  ;;  %s532_s17 = scalar_lea.sflag [#allocation4], %s127_s12 }
  0x38   : > { %p603_p4 = scmp.ne.s32.totalorder %s596_s16, 0 }
  0x39   : > { %s129_s15 = scalar_lea.vmem [#allocation5], %s248_s13  ;;  %s147_s20 = smul.u32 (%p603_p4), 5, %s416_s9 }
  0x3a   : > { %137 = vst [vmem:[%s129_s15] sm:$0xff] %v135_v0  ;;  %138 = vst [vmem:[%s129_s15 + $0x8] sm:$0x3] %v136_v1  ;;  %146 = sbr.rel (!%p603_p4) target bundleno = 92 (0x5c), region = 32 }
  0x3b   : > { %s148_s22 = ssub.s32 (%p603_p4), 16, %s147_s20 }
  0x3c   : > { %p149_p8 = scmp.lt.s32.totalorder (%p603_p4), %s148_s22, 5 }
  0x41   : > { %s613_s22 = smov (!%p149_p8, %s148_s22), 5 }
  0x42   : > { %s537_s21 = sshll.u32 %s613_s22, 5 }
  0x43   : > { %s153_s23 = ssub.s32 160, %s537_s21 }
  0x44   : > { %154 = vsyncadd %s532_s17, %s153_s23  ;;  %p241_p10 = scmp.ne.s32.totalorder %s537_s21, 0  ;;  %s247_s24 = smul.u32 160, %s416_s9 }
  0x45   : > { %s162_s25 = sshll.u32 %s129_s15, 4  ;;  %s427_s29 = smov [#allocation5]   ;;  %s163_s25 = int_to_ptr.vmem [resolvable:$true] %s162_s25 }
  0x46   : > { %s546_s27 = scalar_lea.hbm %s592_s1, %s247_s24  ;;  %s342_s28 = scalar_lea.vmem %s163_s25, %s537_s21 }
  0x47   : > { %p343_p11 = scmp.ne.s32.totalorder %s163_s25, %s342_s28  ;;  %s346_s30 = sshll.u32 %s427_s29, 4  ;;  %s347_s30 = int_to_ptr.vmem [resolvable:$false] %s346_s30 }
  0x48   : > { %s348_s2 = scalar_lea.vmem %s347_s30, 320  ;;  %p349_p3 = scmp.lt.s32.totalorder %s163_s25, %s347_s30 }
  0x49   : > { %p344_p13 = pnand %p343_p11, %p241_p10  ;;  %p350_p5 = scmp.lt.s32.totalorder %s348_s2, %s342_s28 }
  0x4b   : > { %p345_p1 = pneg %p344_p13  ;;  %p351_p6 = por %p350_p5, %p349_p3 }
  0x4d   : > { %p352_p7 = pnand %p351_p6, %p345_p1 }
  0x4f   : > { %355 = shalt.err (!%p352_p7)
}
  0x50   : > { %s356_s9 = scalar_lea.hbm %s546_s27, %s537_s21  ;;  %s360_s5 = scalar_lea.hbm %s592_s1, 512 }
  0x51   : > { %p357_p9 = scmp.ne.s32.totalorder %s546_s27, %s356_s9  ;;  %p361_p2 = scmp.lt.u32.totalorder %s546_s27, %s592_s1 }
  0x52   : > { %p362_p4 = scmp.lt.u32.totalorder %s360_s5, %s356_s9  ;;  %p364_p11 = scmp.lt.u32.totalorder %s356_s9, %s546_s27 }
  0x53   : > { %p358_p12 = pnand %p357_p9, %p241_p10 }
  0x54   : > { %p363_p8 = por %p362_p4, %p361_p2 }
  0x55   : > { %p359_p0 = pneg %p358_p12 }
  0x56   : > { %p365_p13 = por %p364_p11, %p363_p8 }
  0x58   : > { %p366_p1 = pnand %p365_p13, %p359_p0 }
  0x5a   : > { %369 = shalt.err (!%p366_p1)
}
  0x5b   : > { %165 = dma.vmem_to_hbm [thread:$0]  (%p241_p10), %s163_s25, %s537_s21, %s546_s27, %s532_s17  }
  0x5c PF: > { %p264_p3 = scmp.ge.s32.totalorder %s424_s11, 2  ;;  %s174_s15 = sand.u32 1, %s404_s6  }
  0x5d   : > { %p604_p5 = scmp.ne.s32.totalorder %s597_s18, 0  ;;  %s175_s20 = scalar_lea.sflag [#allocation4], %s174_s15 }
  0x5f   : > { %p259_p6 = pnand %p264_p3, %p604_p5 }
  0x61   : > { %399 = dma.done.wait (!%p259_p6), %s175_s20, 160  }
  0x62   : > { %401 = vsyncadd (!%p259_p6), %s175_s20, 4294967136  ;;  %s15_s11 = sadd.s32 1, %s424_s11   ;;  %s605_s6 = smov %s408_s7 }
  0x63   : > { %p12_p7 = scmp.ge.s32.totalorder %s15_s11, 6   ;;  %s606_s7 = smov %s412_s8 }
  0x64   : > { %s607_s8 = smov %s491_s19  ;;  %s608_s9 = smov %s420_s10 }
  0x65   : > { %s609_s10 = smov %s611_s14  ;;  %14 = sbr.rel (!%p12_p7) target bundleno = 5 (0x5), region = 62 }
  0x6c   :  { %180 = vsyncpa [#allocation3], 1 }
  0x6d   :  { %182 = vsyncpa [#allocation3 + $0x1], 1 }
  0x6e   :  { %183 = vsyncpa [#allocation4], 1 }
  0x6f   :  { %185 = vsyncpa [#allocation4 + $0x1], 1 }

</bundles_post_ra>
